<compile_context>
chip_gen: v5e
topology: v5e:2x2
jax: 0.10.0
libtpu: 0.0.40
codegen_flags: <defaults>
</compile_context>

<pallas_src>
import functools

import jax
import jax.numpy as jnp
from jax.experimental import pallas as pl
from jax.experimental.pallas import tpu as pltpu

_LANE = 128      # lane width (last dim)
_SUBLANE = 8     # sublane width (second-to-last dim)


# ---------------------------------------------------------------------------
# helpers
# ---------------------------------------------------------------------------
def _round_up(n, m):
    return ((n + m - 1) // m) * m


def _pad_to(x, multiple, axis):
    size = x.shape[axis]
    rem = (-size) % multiple
    if rem == 0:
        return x
    pad = [(0, 0)] * x.ndim
    pad[axis] = (0, rem)
    return jnp.pad(x, pad)


@functools.lru_cache(maxsize=None)
def _vmem_plan():
    """Returns (fused_budget_bytes, vmem_limit_bytes), generation-aware."""
    try:
        cap = int(pltpu.get_tpu_info().vmem_capacity_bytes)
    except Exception:
        cap = 64 * 1024 * 1024   # conservative: v7x per-TC physical VMEM
    budget = int(cap * 0.70)     # acceptance threshold for the fused path
    limit = int(cap * 0.80)      # scoped VMEM requested from the compiler
    return budget, limit


def _const_spec(shape, weight_buffers):
    """BlockSpec for a VMEM-resident constant (same block every grid step)."""
    if weight_buffers is None:
        return pl.BlockSpec(shape, lambda i: (0, 0))
    # Constant index_map -> a second pipeline buffer is pure VMEM waste.
    return pl.BlockSpec(shape, lambda i: (0, 0),
                        pipeline_mode=pl.Buffered(weight_buffers))


# ---------------------------------------------------------------------------
# fully fused MLP kernel (all weights VMEM-resident, grid over batch rows)
# ---------------------------------------------------------------------------
def _fused_mlp_kernel(x_ref, w1_ref, b1_ref, w2_ref, b2_ref, w3_ref, b3_ref,
                      o_ref):
    # Layer 1: Linear + fused CustomReLU epilogue.
    h = jnp.dot(x_ref[...], w1_ref[...], preferred_element_type=jnp.float32)
    h = jnp.maximum(h + b1_ref[...], 0.0)
    # Layer 2: Linear + fused CustomReLU epilogue.
    h = jnp.dot(h, w2_ref[...], preferred_element_type=jnp.float32)
    h = jnp.maximum(h + b2_ref[...], 0.0)
    # Layer 3: Linear (no activation).
    out = jnp.dot(h, w3_ref[...], preferred_element_type=jnp.float32)
    o_ref[...] = (out + b3_ref[...]).astype(o_ref.dtype)


def _fused_mlp(xp, padded_params, *, tm, weight_buffers, vmem_limit):
    """xp: (Mp, K0p) padded activations; padded_params: 3 padded (W_t, b)."""
    (w1, b1), (w2, b2), (w3, b3) = padded_params
    Mp, K0 = xp.shape
    H1 = w1.shape[1]
    H2 = w2.shape[1]
    N3 = w3.shape[1]

    return pl.pallas_call(
        _fused_mlp_kernel,
        out_shape=jax.ShapeDtypeStruct((Mp, N3), jnp.float32),
        grid_spec=pltpu.PrefetchScalarGridSpec(
            num_scalar_prefetch=0,
            grid=(Mp // tm,),
            in_specs=[
                pl.BlockSpec((tm, K0), lambda i: (i, 0)),       # activations
                _const_spec((K0, H1), weight_buffers),          # W1^T resident
                _const_spec((1, H1), weight_buffers),           # b1
                _const_spec((H1, H2), weight_buffers),          # W2^T resident
                _const_spec((1, H2), weight_buffers),           # b2
                _const_spec((H2, N3), weight_buffers),          # W3^T resident
                _const_spec((1, N3), weight_buffers),           # b3
            ],
            out_specs=pl.BlockSpec((tm, N3), lambda i: (i, 0)),
        ),
        compiler_params=pltpu.CompilerParams(
            # Batch-row axis is embarrassingly parallel -> megacore sharding.
            dimension_semantics=("parallel",),
            vmem_limit_bytes=vmem_limit,
        ),
    )(xp, w1, b1, w2, b2, w3, b3)


# ---------------------------------------------------------------------------
# tiled per-layer fallback (only used when weights don't fit in VMEM)
# ---------------------------------------------------------------------------
def _linear_kernel(x_ref, w_ref, b_ref, o_ref, acc_ref, *, apply_relu):
    k = pl.program_id(2)

    @pl.when(k == 0)
    def _():
        acc_ref[...] = jnp.zeros_like(acc_ref)

    acc_ref[...] += jnp.dot(
        x_ref[...], w_ref[...], preferred_element_type=jnp.float32
    )

    @pl.when(k == pl.num_programs(2) - 1)
    def _():
        out = acc_ref[...] + b_ref[...]
        if apply_relu:
            out = jnp.maximum(out, 0.0)
        o_ref[...] = out.astype(o_ref.dtype)


def _tiled_linear(xp, wp, bp, *, apply_relu, tm, vmem_limit):
    Mp, Kp = xp.shape
    _, Np = wp.shape
    # MXU-friendly tile widths; prefer 512/256 over 128 (256x256 MXU on
    # v6e/v7x).  Kp/Np are 128-multiples so these always divide.
    tk = 512 if Kp % 512 == 0 else (256 if Kp % 256 == 0 else 128)
    tn = 512 if Np % 512 == 0 else (256 if Np % 256 == 0 else 128)
    tk, tn = min(tk, Kp), min(tn, Np)

    kernel = functools.partial(_linear_kernel, apply_relu=apply_relu)
    return pl.pallas_call(
        kernel,
        out_shape=jax.ShapeDtypeStruct((Mp, Np), jnp.float32),
        grid_spec=pltpu.PrefetchScalarGridSpec(
            num_scalar_prefetch=0,
            grid=(Mp // tm, Np // tn, Kp // tk),
            in_specs=[
                pl.BlockSpec((tm, tk), lambda i, j, k: (i, k)),
                pl.BlockSpec((tk, tn), lambda i, j, k: (k, j)),
                pl.BlockSpec((1, tn), lambda i, j, k: (0, j)),
            ],
            out_specs=pl.BlockSpec((tm, tn), lambda i, j, k: (i, j)),
            scratch_shapes=[pltpu.VMEM((tm, tn), jnp.float32)],
        ),
        compiler_params=pltpu.CompilerParams(
            dimension_semantics=("parallel", "parallel", "arbitrary"),
            vmem_limit_bytes=vmem_limit,
        ),
    )(xp, wp, bp)


# ---------------------------------------------------------------------------
# parameters
# ---------------------------------------------------------------------------
def init_mlp_params(key, input_size, hidden_layer_sizes, output_size):
    """Deterministic PyTorch-style (uniform +/- 1/sqrt(fan_in)) init.

    Weights are stored already transposed: (in_features, out_features)."""
    sizes = [input_size] + list(hidden_layer_sizes) + [output_size]
    params = []
    for fan_in, fan_out in zip(sizes[:-1], sizes[1:]):
        key, kw, kb = jax.random.split(key, 3)
        bound = 1.0 / float(fan_in) ** 0.5
        w_t = jax.random.uniform(
            kw, (fan_in, fan_out), jnp.float32, -bound, bound
        )
        b = jax.random.uniform(kb, (fan_out,), jnp.float32, -bound, bound)
        params.append((w_t, b))
    return params


def pad_params(params):
    """Zero-pad weights/biases to 128-multiples ONCE, outside the forward."""
    padded = []
    for w_t, b in params:
        wp = _pad_to(_pad_to(w_t, _LANE, 0), _LANE, 1)
        bp = _pad_to(b.reshape(1, -1), _LANE, 1)
        padded.append((wp, bp))
    return padded


def _fused_footprint_bytes(padded_params, tm, K0p, weight_buffers):
    """VMEM bytes needed by the fused kernel (f32 everywhere)."""
    wmult = 2 if weight_buffers is None else max(1, weight_buffers)
    weights = sum(wp.size + bp.size for wp, bp in padded_params) * 4 * wmult
    widths = [wp.shape[1] for wp, _ in padded_params]
    streamed = tm * (K0p + widths[-1]) * 4 * 2      # pipelined in/out blocks
    temps = tm * sum(widths[:-1]) * 4               # layer intermediates
    return weights + streamed + temps


# ---------------------------------------------------------------------------
# forward
# ---------------------------------------------------------------------------
def mlp_forward(padded_params, output_size, x, *, weight_buffers=1):
    M = x.shape[0]
    n_layers = len(padded_params)
    budget, vmem_limit = _vmem_plan()

    # Batch tile: up to 512 rows (feeds the 256x256 MXU / amortizes per-step
    # overhead), but at least 2 grid steps when the batch allows it so the
    # "parallel" axis can shard across both v7x TensorCores.
    M8 = _round_up(M, _SUBLANE)
    if M8 <= 2 * _SUBLANE:
        tm = M8
    else:
        tm = min(512, _round_up((M8 + 1) // 2, _SUBLANE))

    # Pad activations: columns to the (128-multiple) padded input width,
    # rows to the batch tile. Zero padding is neutral (weight rows are zero).
    xp = _pad_to(_pad_to(x, _LANE, 1), tm, 0)
    Mp, K0p = xp.shape

    use_fused = (
        n_layers == 3
        and _fused_footprint_bytes(padded_params, tm, K0p, weight_buffers)
        <= budget
    )

    if use_fused:
        out_p = _fused_mlp(xp, padded_params, tm=tm,
                           weight_buffers=weight_buffers,
                           vmem_limit=vmem_limit)
    else:
        # Large layers: stream weights per-layer through the tiled kernel.
        h = xp
        for li, (wp, bp) in enumerate(padded_params):
            h = _tiled_linear(h, wp, bp, apply_relu=li < n_layers - 1,
                              tm=tm, vmem_limit=vmem_limit)
        out_p = h

    return out_p[:M, :output_size]   # single slice at the very end


# ---------------------------------------------------------------------------
# demo / correctness check
# ---------------------------------------------------------------------------
if __name__ == "__main__":
    # Small shapes consistent with the module's forward (batch, input_size);
    # deliberately non-128-aligned to exercise the padding paths.
    batch = 8
    input_size = 120
    hidden_layer_sizes = [200, 250]
    output_size = 10

    key = jax.random.PRNGKey(0)
    key, kx = jax.random.split(key)
    x = jax.random.normal(kx, (batch, input_size), jnp.float32)

    params = init_mlp_params(key, input_size, hidden_layer_sizes, output_size)
    params_padded = pad_params(params)   # padded once, reused every forward

    # Pure-JAX reference of the fused MLP (Linear -> ReLU -> ... -> Linear).
    ref = x
    for li, (w_t, b) in enumerate(params):
        ref = ref @ w_t + b
        if li < len(params) - 1:
            ref = jnp.maximum(ref, 0.0)

    def run_and_check(weight_buffers):
        fwd = jax.jit(functools.partial(
            mlp_forward, params_padded, output_size,
            weight_buffers=weight_buffers))
        out = jax.block_until_ready(fwd(x))
        assert out.shape == (batch, output_size)
        assert jnp.allclose(out, ref, atol=1e-4, rtol=1e-4)
        return out

    try:
        # Preferred: weights/biases single-buffered (pipeline_mode=Buffered(1)).
        out = run_and_check(1)
    except Exception:
        # Portable fallback if this Pallas build rejects pipeline_mode.
        out = run_and_check(None)

    print("KERNEL_OK")
</pallas_src>

<mosaic_0001>
module attributes {stable_mosaic.version = 11 : i64} {
  func.func @_fused_mlp_kernel(%arg0: i32, %arg1: memref<8x128xf32, #tpu.memory_space<vmem>>, %arg2: memref<128x256xf32, #tpu.memory_space<vmem>>, %arg3: memref<1x256xf32, #tpu.memory_space<vmem>>, %arg4: memref<256x256xf32, #tpu.memory_space<vmem>>, %arg5: memref<1x256xf32, #tpu.memory_space<vmem>>, %arg6: memref<256x128xf32, #tpu.memory_space<vmem>>, %arg7: memref<1x128xf32, #tpu.memory_space<vmem>>, %arg8: memref<8x128xf32, #tpu.memory_space<vmem>>) attributes {dimension_semantics = [#tpu.dimension_semantics<parallel>], iteration_bounds = array<i64: 1>, scalar_prefetch = 0 : i64, scratch_operands = 0 : i64, tpu.core_type = #tpu.core_type<tc>, window_params = [{transform_indices = @transform_0, window_bounds = array<i64: 8, 128>}, {pipeline_mode = #tpu.pipeline_mode<synchronous>, transform_indices = @transform_1, window_bounds = array<i64: 128, 256>}, {pipeline_mode = #tpu.pipeline_mode<synchronous>, transform_indices = @transform_2, window_bounds = array<i64: 1, 256>}, {pipeline_mode = #tpu.pipeline_mode<synchronous>, transform_indices = @transform_3, window_bounds = array<i64: 256, 256>}, {pipeline_mode = #tpu.pipeline_mode<synchronous>, transform_indices = @transform_4, window_bounds = array<i64: 1, 256>}, {pipeline_mode = #tpu.pipeline_mode<synchronous>, transform_indices = @transform_5, window_bounds = array<i64: 256, 128>}, {pipeline_mode = #tpu.pipeline_mode<synchronous>, transform_indices = @transform_6, window_bounds = array<i64: 1, 128>}, {transform_indices = @transform_7, window_bounds = array<i64: 8, 128>}]} {
    %c0 = arith.constant 0 : index
    %c0_0 = arith.constant 0 : index
    %0 = vector.load %arg1[%c0, %c0_0] : memref<8x128xf32, #tpu.memory_space<vmem>>, vector<8x128xf32>
    %c0_1 = arith.constant 0 : index
    %c0_2 = arith.constant 0 : index
    %1 = vector.load %arg2[%c0_1, %c0_2] : memref<128x256xf32, #tpu.memory_space<vmem>>, vector<128x256xf32>
    %cst = arith.constant dense<0.000000e+00> : vector<8x256xf32>
    %2 = tpu.matmul %0, %1, %cst {dimension_numbers = #tpu.dot_dimension_numbers<[1], [0], [0], [1], [0, 0, 1, 1], [], []>} : vector<8x128xf32>, vector<128x256xf32>, vector<8x256xf32> -> vector<8x256xf32>
    %c0_3 = arith.constant 0 : index
    %c0_4 = arith.constant 0 : index
    %3 = vector.load %arg3[%c0_3, %c0_4] : memref<1x256xf32, #tpu.memory_space<vmem>>, vector<1x256xf32>
    %4 = vector.broadcast %3 : vector<1x256xf32> to vector<8x256xf32>
    %5 = arith.addf %2, %4 : vector<8x256xf32>
    %cst_5 = arith.constant 0.000000e+00 : f32
    %6 = vector.broadcast %cst_5 : f32 to vector<8x256xf32>
    %7 = arith.maximumf %5, %6 : vector<8x256xf32>
    %c0_6 = arith.constant 0 : index
    %c0_7 = arith.constant 0 : index
    %8 = vector.load %arg4[%c0_6, %c0_7] : memref<256x256xf32, #tpu.memory_space<vmem>>, vector<256x256xf32>
    %cst_8 = arith.constant dense<0.000000e+00> : vector<8x256xf32>
    %9 = tpu.matmul %7, %8, %cst_8 {dimension_numbers = #tpu.dot_dimension_numbers<[1], [0], [0], [1], [0, 0, 1, 1], [], []>} : vector<8x256xf32>, vector<256x256xf32>, vector<8x256xf32> -> vector<8x256xf32>
    %c0_9 = arith.constant 0 : index
    %c0_10 = arith.constant 0 : index
    %10 = vector.load %arg5[%c0_9, %c0_10] : memref<1x256xf32, #tpu.memory_space<vmem>>, vector<1x256xf32>
    %11 = vector.broadcast %10 : vector<1x256xf32> to vector<8x256xf32>
    %12 = arith.addf %9, %11 : vector<8x256xf32>
    %cst_11 = arith.constant 0.000000e+00 : f32
    %13 = vector.broadcast %cst_11 : f32 to vector<8x256xf32>
    %14 = arith.maximumf %12, %13 : vector<8x256xf32>
    %c0_12 = arith.constant 0 : index
    %c0_13 = arith.constant 0 : index
    %15 = vector.load %arg6[%c0_12, %c0_13] : memref<256x128xf32, #tpu.memory_space<vmem>>, vector<256x128xf32>
    %cst_14 = arith.constant dense<0.000000e+00> : vector<8x128xf32>
    %16 = tpu.matmul %14, %15, %cst_14 {dimension_numbers = #tpu.dot_dimension_numbers<[1], [0], [0], [1], [0, 0, 1, 1], [], []>} : vector<8x256xf32>, vector<256x128xf32>, vector<8x128xf32> -> vector<8x128xf32>
    %c0_15 = arith.constant 0 : index
    %c0_16 = arith.constant 0 : index
    %17 = vector.load %arg7[%c0_15, %c0_16] : memref<1x128xf32, #tpu.memory_space<vmem>>, vector<1x128xf32>
    %18 = vector.broadcast %17 : vector<1x128xf32> to vector<8x128xf32>
    %19 = arith.addf %16, %18 : vector<8x128xf32>
    %c0_17 = arith.constant 0 : index
    %c0_18 = arith.constant 0 : index
    %20 = vector.load %arg8[%c0_17, %c0_18] : memref<8x128xf32, #tpu.memory_space<vmem>>, vector<8x128xf32>
    tpu.vector_store %arg8[%c0_17, %c0_18], %19 {strides = array<i32>} : memref<8x128xf32, #tpu.memory_space<vmem>>, vector<8x128xf32>,
    return
  }
  func.func @transform_0(%arg0: i32) -> (i32, i32) {
    %c0_i32 = arith.constant 0 : i32
    %c0_i32_0 = arith.constant 0 : i32
    return %arg0, %c0_i32 : i32, i32
  }
  func.func @transform_1(%arg0: i32) -> (i32, i32) {
    %c0_i32 = arith.constant 0 : i32
    %c0_i32_0 = arith.constant 0 : i32
    %c0_i32_1 = arith.constant 0 : i32
    return %c0_i32, %c0_i32_0 : i32, i32
  }
  func.func @transform_2(%arg0: i32) -> (i32, i32) {
    %c0_i32 = arith.constant 0 : i32
    %c0_i32_0 = arith.constant 0 : i32
    %c0_i32_1 = arith.constant 0 : i32
    return %c0_i32, %c0_i32_0 : i32, i32
  }
  func.func @transform_3(%arg0: i32) -> (i32, i32) {
    %c0_i32 = arith.constant 0 : i32
    %c0_i32_0 = arith.constant 0 : i32
    %c0_i32_1 = arith.constant 0 : i32
    return %c0_i32, %c0_i32_0 : i32, i32
  }
  func.func @transform_4(%arg0: i32) -> (i32, i32) {
    %c0_i32 = arith.constant 0 : i32
    %c0_i32_0 = arith.constant 0 : i32
    %c0_i32_1 = arith.constant 0 : i32
    return %c0_i32, %c0_i32_0 : i32, i32
  }
  func.func @transform_5(%arg0: i32) -> (i32, i32) {
    %c0_i32 = arith.constant 0 : i32
    %c0_i32_0 = arith.constant 0 : i32
    %c0_i32_1 = arith.constant 0 : i32
    return %c0_i32, %c0_i32_0 : i32, i32
  }
  func.func @transform_6(%arg0: i32) -> (i32, i32) {
    %c0_i32 = arith.constant 0 : i32
    %c0_i32_0 = arith.constant 0 : i32
    %c0_i32_1 = arith.constant 0 : i32
    return %c0_i32, %c0_i32_0 : i32, i32
  }
  func.func @transform_7(%arg0: i32) -> (i32, i32) {
    %c0_i32 = arith.constant 0 : i32
    %c0_i32_0 = arith.constant 0 : i32
    return %arg0, %c0_i32 : i32, i32
  }
}

module attributes {stable_mosaic.version = 11 : i64} {
  func.func @_fused_mlp_kernel(%arg0: i32, %arg1: memref<8x128xf32, #tpu.memory_space<vmem>>, %arg2: memref<128x256xf32, #tpu.memory_space<vmem>>, %arg3: memref<1x256xf32, #tpu.memory_space<vmem>>, %arg4: memref<256x256xf32, #tpu.memory_space<vmem>>, %arg5: memref<1x256xf32, #tpu.memory_space<vmem>>, %arg6: memref<256x128xf32, #tpu.memory_space<vmem>>, %arg7: memref<1x128xf32, #tpu.memory_space<vmem>>, %arg8: memref<8x128xf32, #tpu.memory_space<vmem>>) attributes {dimension_semantics = [#tpu.dimension_semantics<parallel>], iteration_bounds = array<i64: 1>, scalar_prefetch = 0 : i64, scratch_operands = 0 : i64, tpu.core_type = #tpu.core_type<tc>, window_params = [{transform_indices = @transform_0, window_bounds = array<i64: 8, 128>}, {pipeline_mode = #tpu.pipeline_mode<synchronous>, transform_indices = @transform_1, window_bounds = array<i64: 128, 256>}, {pipeline_mode = #tpu.pipeline_mode<synchronous>, transform_indices = @transform_2, window_bounds = array<i64: 1, 256>}, {pipeline_mode = #tpu.pipeline_mode<synchronous>, transform_indices = @transform_3, window_bounds = array<i64: 256, 256>}, {pipeline_mode = #tpu.pipeline_mode<synchronous>, transform_indices = @transform_4, window_bounds = array<i64: 1, 256>}, {pipeline_mode = #tpu.pipeline_mode<synchronous>, transform_indices = @transform_5, window_bounds = array<i64: 256, 128>}, {pipeline_mode = #tpu.pipeline_mode<synchronous>, transform_indices = @transform_6, window_bounds = array<i64: 1, 128>}, {transform_indices = @transform_7, window_bounds = array<i64: 8, 128>}]} {
    %c0 = arith.constant 0 : index
    %c0_0 = arith.constant 0 : index
    %0 = vector.load %arg1[%c0, %c0_0] : memref<8x128xf32, #tpu.memory_space<vmem>>, vector<8x128xf32>
    %c0_1 = arith.constant 0 : index
    %c0_2 = arith.constant 0 : index
    %1 = vector.load %arg2[%c0_1, %c0_2] : memref<128x256xf32, #tpu.memory_space<vmem>>, vector<128x256xf32>
    %cst = arith.constant dense<0.000000e+00> : vector<8x256xf32>
    %2 = tpu.matmul %0, %1, %cst {dimension_numbers = #tpu.dot_dimension_numbers<[1], [0], [0], [1], [0, 0, 1, 1], [], []>} : vector<8x128xf32>, vector<128x256xf32>, vector<8x256xf32> -> vector<8x256xf32>
    %c0_3 = arith.constant 0 : index
    %c0_4 = arith.constant 0 : index
    %3 = vector.load %arg3[%c0_3, %c0_4] : memref<1x256xf32, #tpu.memory_space<vmem>>, vector<1x256xf32>
    %4 = vector.broadcast %3 : vector<1x256xf32> to vector<8x256xf32>
    %5 = arith.addf %2, %4 : vector<8x256xf32>
    %cst_5 = arith.constant 0.000000e+00 : f32
    %6 = vector.broadcast %cst_5 : f32 to vector<8x256xf32>
    %7 = arith.maximumf %5, %6 : vector<8x256xf32>
    %c0_6 = arith.constant 0 : index
    %c0_7 = arith.constant 0 : index
    %8 = vector.load %arg4[%c0_6, %c0_7] : memref<256x256xf32, #tpu.memory_space<vmem>>, vector<256x256xf32>
    %cst_8 = arith.constant dense<0.000000e+00> : vector<8x256xf32>
    %9 = tpu.matmul %7, %8, %cst_8 {dimension_numbers = #tpu.dot_dimension_numbers<[1], [0], [0], [1], [0, 0, 1, 1], [], []>} : vector<8x256xf32>, vector<256x256xf32>, vector<8x256xf32> -> vector<8x256xf32>
    %c0_9 = arith.constant 0 : index
    %c0_10 = arith.constant 0 : index
    %10 = vector.load %arg5[%c0_9, %c0_10] : memref<1x256xf32, #tpu.memory_space<vmem>>, vector<1x256xf32>
    %11 = vector.broadcast %10 : vector<1x256xf32> to vector<8x256xf32>
    %12 = arith.addf %9, %11 : vector<8x256xf32>
    %cst_11 = arith.constant 0.000000e+00 : f32
    %13 = vector.broadcast %cst_11 : f32 to vector<8x256xf32>
    %14 = arith.maximumf %12, %13 : vector<8x256xf32>
    %c0_12 = arith.constant 0 : index
    %c0_13 = arith.constant 0 : index
    %15 = vector.load %arg6[%c0_12, %c0_13] : memref<256x128xf32, #tpu.memory_space<vmem>>, vector<256x128xf32>
    %cst_14 = arith.constant dense<0.000000e+00> : vector<8x128xf32>
    %16 = tpu.matmul %14, %15, %cst_14 {dimension_numbers = #tpu.dot_dimension_numbers<[1], [0], [0], [1], [0, 0, 1, 1], [], []>} : vector<8x256xf32>, vector<256x128xf32>, vector<8x128xf32> -> vector<8x128xf32>
    %c0_15 = arith.constant 0 : index
    %c0_16 = arith.constant 0 : index
    %17 = vector.load %arg7[%c0_15, %c0_16] : memref<1x128xf32, #tpu.memory_space<vmem>>, vector<1x128xf32>
    %18 = vector.broadcast %17 : vector<1x128xf32> to vector<8x128xf32>
    %19 = arith.addf %16, %18 : vector<8x128xf32>
    %c0_17 = arith.constant 0 : index
    %c0_18 = arith.constant 0 : index
    %20 = vector.load %arg8[%c0_17, %c0_18] : memref<8x128xf32, #tpu.memory_space<vmem>>, vector<8x128xf32>
    tpu.vector_store %arg8[%c0_17, %c0_18], %19 {strides = array<i32>} : memref<8x128xf32, #tpu.memory_space<vmem>>, vector<8x128xf32>,
    return
  }
  func.func @transform_0(%arg0: i32) -> (i32, i32) {
    %c0_i32 = arith.constant 0 : i32
    %c0_i32_0 = arith.constant 0 : i32
    return %arg0, %c0_i32 : i32, i32
  }
  func.func @transform_1(%arg0: i32) -> (i32, i32) {
    %c0_i32 = arith.constant 0 : i32
    %c0_i32_0 = arith.constant 0 : i32
    %c0_i32_1 = arith.constant 0 : i32
    return %c0_i32, %c0_i32_0 : i32, i32
  }
  func.func @transform_2(%arg0: i32) -> (i32, i32) {
    %c0_i32 = arith.constant 0 : i32
    %c0_i32_0 = arith.constant 0 : i32
    %c0_i32_1 = arith.constant 0 : i32
    return %c0_i32, %c0_i32_0 : i32, i32
  }
  func.func @transform_3(%arg0: i32) -> (i32, i32) {
    %c0_i32 = arith.constant 0 : i32
    %c0_i32_0 = arith.constant 0 : i32
    %c0_i32_1 = arith.constant 0 : i32
    return %c0_i32, %c0_i32_0 : i32, i32
  }
  func.func @transform_4(%arg0: i32) -> (i32, i32) {
    %c0_i32 = arith.constant 0 : i32
    %c0_i32_0 = arith.constant 0 : i32
    %c0_i32_1 = arith.constant 0 : i32
    return %c0_i32, %c0_i32_0 : i32, i32
  }
  func.func @transform_5(%arg0: i32) -> (i32, i32) {
    %c0_i32 = arith.constant 0 : i32
    %c0_i32_0 = arith.constant 0 : i32
    %c0_i32_1 = arith.constant 0 : i32
    return %c0_i32, %c0_i32_0 : i32, i32
  }
  func.func @transform_6(%arg0: i32) -> (i32, i32) {
    %c0_i32 = arith.constant 0 : i32
    %c0_i32_0 = arith.constant 0 : i32
    %c0_i32_1 = arith.constant 0 : i32
    return %c0_i32, %c0_i32_0 : i32, i32
  }
  func.func @transform_7(%arg0: i32) -> (i32, i32) {
    %c0_i32 = arith.constant 0 : i32
    %c0_i32_0 = arith.constant 0 : i32
    return %arg0, %c0_i32 : i32, i32
  }
}

</mosaic_0001>

<bundles_post_ra>
// kernel: mlp_forward.1
= control target key start
LH: loop header
LB: loop body
LE: loop exit
PB: predicated region body
PF: predicated region fallthrough
CT: control target
= control target key end

     0   :  { %12 = vsyncpa [#allocation3], 0  ;;  %s585_s0 = inlined_call_operand.vmem [shape: f32[8,128], index: 0, kind: input, shape index: {}]   ;;  %s586_s1 = inlined_call_operand.hbm [shape: f32[128,256], index: 1, kind: input, shape index: {}]   ;;  %s587_s2 = inlined_call_operand.vmem [shape: f32[1,256], index: 2, kind: input, shape index: {}]   ;;  %s588_s3 = inlined_call_operand.hbm [shape: f32[256,256], index: 3, kind: input, shape index: {}]   ;;  %s589_s4 = inlined_call_operand.vmem [shape: f32[1,256], index: 4, kind: input, shape index: {}]   ;;  %s590_s5 = inlined_call_operand.hbm [shape: f32[256,128], index: 5, kind: input, shape index: {}]   ;;  %s591_s6 = inlined_call_operand.vmem [shape: f32[1,128], index: 6, kind: input, shape index: {}]   ;;  %s592_s7 = inlined_call_operand.hbm [shape: f32[8,128], index: 7, kind: output, shape index: {}]  }
   0x1   :  { %13 = vsyncpa [#allocation6], 0 }
   0x2   :  { %14 = vsyncpa [#allocation4], 0  ;;  %s36_s26 = sshll.u32 %s588_s3, 4  ;;  %s513_s27 = smov [#allocation5]   ;;  %s37_s26 = int_to_ptr.hbm [resolvable:$true] %s36_s26 }
   0x3   :  { %s38_s28 = sshll.u32 %s513_s27, 4  ;;  %s21_s8 = sshll.u32 %s586_s1, 4  ;;  %s39_s28 = int_to_ptr.vmem [resolvable:$true] %s38_s28  ;;  %s22_s8 = int_to_ptr.hbm [resolvable:$true] %s21_s8 }
   0x4   :  { %s514_s9 = smov 256   ;;  %s515_s10 = smov 16  }
   0x5   :  { %44 = dma.hbm_to_vmem [thread:$0]  %s37_s26, 8192, %s39_s28, [#allocation6], %s514_s9, %s514_s9, %s515_s10  }
   0x6   :  { %s516_s11 = smov [#allocation2]   ;;  %s51_s15 = sshll.u32 %s590_s5, 4  ;;  %s52_s15 = int_to_ptr.hbm [resolvable:$true] %s51_s15 }
   0x7   :  { %s23_s12 = sshll.u32 %s516_s11, 4  ;;  %s517_s3 = smov [#allocation7]   ;;  %s24_s12 = int_to_ptr.vmem [resolvable:$true] %s23_s12 }
   0x8   :  { %29 = dma.hbm_to_vmem [thread:$0]  %s22_s8, 4096, %s24_s12, [#allocation3], %s514_s9, %s514_s9, %s515_s10  }
   0x9   :  { %s53_s16 = sshll.u32 %s517_s3, 4  ;;  %s518_s17 = smov 128   ;;  %s54_s16 = int_to_ptr.vmem [resolvable:$true] %s53_s16 }
   0xa   :  { %s519_s18 = smov 8  }
   0xb   :  { %59 = dma.hbm_to_vmem [thread:$0]  %s52_s15, 4096, %s54_s16, [#allocation6], %s518_s17, %s518_s17, %s519_s18  }
   0xc   :  { %507 = dma.done.wait [#allocation3], 4096  }
   0xd   :  { %508 = vsyncadd [#allocation3], 4294963200 }
   0xe   :  { %509 = dma.done.wait [#allocation6], 12288  }
   0xf   :  { %510 = vsyncadd [#allocation6], 4294955008  ;;  %v105_v0 = vld [vmem:[#allocation2 + $0xf0] sm:$0xff]  ;;  %v103_v1 = vld [vmem:[#allocation2 + $0xe0] sm:$0xff]  ;;  %s391_s26 = sshll.u32 %s592_s7, 4  ;;  %s392_s26 = int_to_ptr.hbm [resolvable:$true] %s391_s26 }
  0x10   :  { %v106_v2 = vld [vmem:[#allocation2 + $0xf8] sm:$0xff]  ;;  %113 = vmatpush.msra.mxu0 %v105_v0  ;;  %v104_v3 = vld [vmem:[#allocation2 + $0xe8] sm:$0xff]  ;;  %v101_v4 = vld [vmem:[#allocation2 + $0xd0] sm:$0xff] }
  0x11   :  { %133 = vmatpush.msra.mxu1 %v106_v2  ;;  %v102_v5 = vld [vmem:[#allocation2 + $0xd8] sm:$0xff]  ;;  %v99_v6 = vld [vmem:[#allocation2 + $0xc0] sm:$0xff]  ;;  %v100_v7 = vld [vmem:[#allocation2 + $0xc8] sm:$0xff] }
  0x12   :  { %114 = vmatpush.msra.mxu0 %v103_v1  ;;  %v97_v8 = vld [vmem:[#allocation2 + $0xb0] sm:$0xff]  ;;  %v98_v9 = vld [vmem:[#allocation2 + $0xb8] sm:$0xff]  ;;  %v95_v10 = vld [vmem:[#allocation2 + $0xa0] sm:$0xff] }
  0x13   :  { %134 = vmatpush.msra.mxu1 %v104_v3  ;;  %v96_v11 = vld [vmem:[#allocation2 + $0xa8] sm:$0xff]  ;;  %v93_v12 = vld [vmem:[#allocation2 + $0x90] sm:$0xff]  ;;  %v94_v13 = vld [vmem:[#allocation2 + $0x98] sm:$0xff] }
  0x14   :  { %115 = vmatpush.msra.mxu0 %v101_v4  ;;  %v185_v14 = vld [vmem:[#allocation5 + $0xf0] sm:$0xff]  ;;  %v183_v15 = vld [vmem:[#allocation5 + $0xe0] sm:$0xff]  ;;  %v92_v17 = vld [vmem:[#allocation2 + $0x88] sm:$0xff] }
  0x15   :  { %135 = vmatpush.msra.mxu1 %v102_v5  ;;  %v91_v16 = vld [vmem:[#allocation2 + $0x80] sm:$0xff]  ;;  %225 = vmatpush.msra.mxu2 %v185_v14  ;;  %v217_v18 = vld [vmem:[#allocation5 + $0x1f0] sm:$0xff]  ;;  %v90_v22 = vld [vmem:[#allocation2 + $0x78] sm:$0xff] }
  0x16   :  { %116 = vmatpush.msra.mxu0 %v99_v6  ;;  %v181_v19 = vld [vmem:[#allocation5 + $0xd0] sm:$0xff]  ;;  %v215_v20 = vld [vmem:[#allocation5 + $0x1e0] sm:$0xff]  ;;  %245 = vmatpush.msra.mxu3 %v217_v18  ;;  %v88_v26 = vld [vmem:[#allocation2 + $0x68] sm:$0xff] }
  0x17   :  { %136 = vmatpush.msra.mxu1 %v100_v7  ;;  %v89_v21 = vld [vmem:[#allocation2 + $0x70] sm:$0xff]  ;;  %226 = vmatpush.msra.mxu2 %v183_v15  ;;  %v179_v23 = vld [vmem:[#allocation5 + $0xc0] sm:$0xff]  ;;  %v86_v30 = vld [vmem:[#allocation2 + $0x58] sm:$0xff] }
  0x18   :  { %117 = vmatpush.msra.mxu0 %v97_v8  ;;  %v213_v24 = vld [vmem:[#allocation5 + $0x1d0] sm:$0xff]  ;;  %v87_v25 = vld [vmem:[#allocation2 + $0x60] sm:$0xff]  ;;  %246 = vmatpush.msra.mxu3 %v215_v20  ;;  %v84_v34 = vld [vmem:[#allocation2 + $0x48] sm:$0xff] }
  0x19   :  { %137 = vmatpush.msra.mxu1 %v98_v9  ;;  %227 = vmatpush.msra.mxu2 %v181_v19  ;;  %v177_v27 = vld [vmem:[#allocation5 + $0xb0] sm:$0xff]  ;;  %v211_v28 = vld [vmem:[#allocation5 + $0x1c0] sm:$0xff]  ;;  %v82_v38 = vld [vmem:[#allocation2 + $0x38] sm:$0xff] }
  0x1a   :  { %118 = vmatpush.msra.mxu0 %v95_v10  ;;  %v85_v29 = vld [vmem:[#allocation2 + $0x50] sm:$0xff]  ;;  %247 = vmatpush.msra.mxu3 %v213_v24  ;;  %v175_v31 = vld [vmem:[#allocation5 + $0xa0] sm:$0xff]  ;;  %v80_v42 = vld [vmem:[#allocation2 + $0x28] sm:$0xff] }
  0x1b   :  { %138 = vmatpush.msra.mxu1 %v96_v11  ;;  %228 = vmatpush.msra.mxu2 %v179_v23  ;;  %v209_v32 = vld [vmem:[#allocation5 + $0x1b0] sm:$0xff]  ;;  %v83_v33 = vld [vmem:[#allocation2 + $0x40] sm:$0xff]  ;;  %v78_v46 = vld [vmem:[#allocation2 + $0x18] sm:$0xff] }
  0x1c   :  { %119 = vmatpush.msra.mxu0 %v93_v12  ;;  %248 = vmatpush.msra.mxu3 %v211_v28  ;;  %v173_v35 = vld [vmem:[#allocation5 + $0x90] sm:$0xff]  ;;  %v207_v36 = vld [vmem:[#allocation5 + $0x1a0] sm:$0xff]  ;;  %v76_v50 = vld [vmem:[#allocation2 + $0x8] sm:$0xff] }
  0x1d   :  { %139 = vmatpush.msra.mxu1 %v94_v13  ;;  %229 = vmatpush.msra.mxu2 %v177_v27  ;;  %v81_v37 = vld [vmem:[#allocation2 + $0x30] sm:$0xff]  ;;  %v171_v39 = vld [vmem:[#allocation5 + $0x80] sm:$0xff]  ;;  %v186_v52 = vld [vmem:[#allocation5 + $0xf8] sm:$0xff] }
  0x1e   :  { %120 = vmatpush.msra.mxu0 %v91_v16  ;;  %249 = vmatpush.msra.mxu3 %v209_v32  ;;  %v205_v40 = vld [vmem:[#allocation5 + $0x190] sm:$0xff]  ;;  %v79_v41 = vld [vmem:[#allocation2 + $0x20] sm:$0xff]  ;;  %v218_v53 = vld [vmem:[#allocation5 + $0x1f8] sm:$0xff] }
  0x1f   :  { %140 = vmatpush.msra.mxu1 %v92_v17  ;;  %230 = vmatpush.msra.mxu2 %v175_v31  ;;  %v169_v43 = vld [vmem:[#allocation5 + $0x70] sm:$0xff]  ;;  %v203_v44 = vld [vmem:[#allocation5 + $0x180] sm:$0xff]  ;;  %v184_v56 = vld [vmem:[#allocation5 + $0xe8] sm:$0xff] }
  0x20   :  { %121 = vmatpush.msra.mxu0 %v89_v21  ;;  %250 = vmatpush.msra.mxu3 %v207_v36  ;;  %v77_v45 = vld [vmem:[#allocation2 + $0x10] sm:$0xff]  ;;  %v167_v47 = vld [vmem:[#allocation5 + $0x60] sm:$0xff]  ;;  %v216_v57 = vld [vmem:[#allocation5 + $0x1e8] sm:$0xff] }
  0x21   :  { %141 = vmatpush.msra.mxu1 %v90_v22  ;;  %231 = vmatpush.msra.mxu2 %v173_v35  ;;  %v201_v48 = vld [vmem:[#allocation5 + $0x170] sm:$0xff]  ;;  %v75_v49 = vld [vmem:[#allocation2] sm:$0xff]  ;;  %v182_v60 = vld [vmem:[#allocation5 + $0xd8] sm:$0xff] }
  0x22   :  { %122 = vmatpush.msra.mxu0 %v87_v25  ;;  %251 = vmatpush.msra.mxu3 %v205_v40  ;;  %v74_v51 = vld [vmem:[%s585_s0] sm:$0xff]  ;;  %v165_v54 = vld [vmem:[#allocation5 + $0x50] sm:$0xff]  ;;  %v214_v61 = vld [vmem:[#allocation5 + $0x1d8] sm:$0xff] }
  0x23   :  { %142 = vmatpush.msra.mxu1 %v88_v26  ;;  %232 = vmatpush.msra.mxu2 %v171_v39  ;;  %v199_v55 = vld [vmem:[#allocation5 + $0x160] sm:$0xff]  ;;  %v197_v59 = vld [vmem:[#allocation5 + $0x150] sm:$0xff]  ;;  %v180_v0 = vld [vmem:[#allocation5 + $0xc8] sm:$0xff] }
  0x24   :  { %123 = vmatpush.msra.mxu0 %v85_v29  ;;  %252 = vmatpush.msra.mxu3 %v203_v44  ;;  %v163_v58 = vld [vmem:[#allocation5 + $0x40] sm:$0xff]  ;;  %v161_v62 = vld [vmem:[#allocation5 + $0x30] sm:$0xff]  ;;  %v212_v1 = vld [vmem:[#allocation5 + $0x1c8] sm:$0xff] }
  0x25   :  { %143 = vmatpush.msra.mxu1 %v86_v30  ;;  %233 = vmatpush.msra.mxu2 %v169_v43  ;;  %v195_v63 = vld [vmem:[#allocation5 + $0x140] sm:$0xff]  ;;  %v178_v2 = vld [vmem:[#allocation5 + $0xb8] sm:$0xff]  ;;  %v176_v4 = vld [vmem:[#allocation5 + $0xa8] sm:$0xff] }
  0x26   :  { %124 = vmatpush.msra.mxu0 %v83_v33  ;;  %253 = vmatpush.msra.mxu3 %v201_v48  ;;  %v210_v3 = vld [vmem:[#allocation5 + $0x1b8] sm:$0xff]  ;;  %v208_v5 = vld [vmem:[#allocation5 + $0x1a8] sm:$0xff]  ;;  %v159_v19 = vld [vmem:[#allocation5 + $0x20] sm:$0xff] }
  0x27   :  { %144 = vmatpush.msra.mxu1 %v84_v34  ;;  %234 = vmatpush.msra.mxu2 %v167_v47  ;;  %v174_v6 = vld [vmem:[#allocation5 + $0x98] sm:$0xff]  ;;  %v172_v8 = vld [vmem:[#allocation5 + $0x88] sm:$0xff]  ;;  %v193_v20 = vld [vmem:[#allocation5 + $0x130] sm:$0xff] }
  0x28   :  { %125 = vmatpush.msra.mxu0 %v81_v37  ;;  %254 = vmatpush.msra.mxu3 %v199_v55  ;;  %v206_v7 = vld [vmem:[#allocation5 + $0x198] sm:$0xff]  ;;  %v204_v9 = vld [vmem:[#allocation5 + $0x188] sm:$0xff]  ;;  %v157_v23 = vld [vmem:[#allocation5 + $0x10] sm:$0xff] }
  0x29   :  { %145 = vmatpush.msra.mxu1 %v82_v38  ;;  %235 = vmatpush.msra.mxu2 %v165_v54  ;;  %v170_v10 = vld [vmem:[#allocation5 + $0x78] sm:$0xff]  ;;  %v168_v12 = vld [vmem:[#allocation5 + $0x68] sm:$0xff]  ;;  %v191_v24 = vld [vmem:[#allocation5 + $0x120] sm:$0xff] }
  0x2a   :  { %126 = vmatpush.msra.mxu0 %v79_v41  ;;  %255 = vmatpush.msra.mxu3 %v197_v59  ;;  %v202_v11 = vld [vmem:[#allocation5 + $0x178] sm:$0xff]  ;;  %v200_v13 = vld [vmem:[#allocation5 + $0x168] sm:$0xff]  ;;  %v155_v27 = vld [vmem:[#allocation5] sm:$0xff] }
  0x2b   :  { %146 = vmatpush.msra.mxu1 %v80_v42  ;;  %236 = vmatpush.msra.mxu2 %v163_v58  ;;  %v166_v14 = vld [vmem:[#allocation5 + $0x58] sm:$0xff]  ;;  %v164_v16 = vld [vmem:[#allocation5 + $0x48] sm:$0xff]  ;;  %v189_v28 = vld [vmem:[#allocation5 + $0x110] sm:$0xff] }
  0x2c   :  { %127 = vmatpush.msra.mxu0 %v77_v45  ;;  %256 = vmatpush.msra.mxu3 %v195_v63  ;;  %v198_v15 = vld [vmem:[#allocation5 + $0x158] sm:$0xff]  ;;  %v196_v17 = vld [vmem:[#allocation5 + $0x148] sm:$0xff]  ;;  %v187_v31 = vld [vmem:[#allocation5 + $0x100] sm:$0xff] }
  0x2d   :  { %147 = vmatpush.msra.mxu1 %v78_v46  ;;  %237 = vmatpush.msra.mxu2 %v161_v62  ;;  %v162_v18 = vld [vmem:[#allocation5 + $0x38] sm:$0xff]  ;;  %v160_v21 = vld [vmem:[#allocation5 + $0x28] sm:$0xff]  ;;  %v337_v34 = vld [vmem:[#allocation7 + $0xf0] sm:$0xff] }
  0x2e   :  { %128 = vmatpush.msra.mxu0 %v75_v49  ;;  %257 = vmatpush.msra.mxu3 %v193_v20  ;;  %v194_v22 = vld [vmem:[#allocation5 + $0x138] sm:$0xff]  ;;  %v192_v26 = vld [vmem:[#allocation5 + $0x128] sm:$0xff]  ;;  %v321_v36 = vld [vmem:[#allocation7 + $0x70] sm:$0xff] }
  0x2f   :  { %148 = vmatpush.msra.mxu1 %v76_v50  ;;  %129 = vmatmul.f32.vlgmr.msra.gmra.mxu0 %v74_v51  ;;  %v158_v25 = vld [vmem:[#allocation5 + $0x18] sm:$0xff]  ;;  %v156_v29 = vld [vmem:[#allocation5 + $0x8] sm:$0xff]  ;;  %v335_v39 = vld [vmem:[#allocation7 + $0xe0] sm:$0xff] }
  0x30   :  { %149 = vmatmul.f32.vlgmr.msra.gmra.mxu1 %v74_v51  ;;  %265 = vmatpush.msrb.mxu0 %v186_v52  ;;  %v190_v30 = vld [vmem:[#allocation5 + $0x118] sm:$0xff]  ;;  %v188_v32 = vld [vmem:[#allocation5 + $0x108] sm:$0xff]  ;;  %v319_v40 = vld [vmem:[#allocation7 + $0x60] sm:$0xff] }
  0x31   :  { %285 = vmatpush.msrb.mxu1 %v218_v53  ;;  %238 = vmatpush.msra.mxu2 %v159_v19  ;;  %v338_v33 = vld [vmem:[#allocation7 + $0xf8] sm:$0xff]  ;;  %v336_v37 = vld [vmem:[#allocation7 + $0xe8] sm:$0xff]  ;;  %v333_v43 = vld [vmem:[#allocation7 + $0xd0] sm:$0xff] }
  0x32   :  { %266 = vmatpush.msrb.mxu0 %v184_v56  ;;  %258 = vmatpush.msra.mxu3 %v191_v24  ;;  %v322_v35 = vld [vmem:[#allocation7 + $0x78] sm:$0xff]  ;;  %v320_v38 = vld [vmem:[#allocation7 + $0x68] sm:$0xff]  ;;  %v317_v44 = vld [vmem:[#allocation7 + $0x50] sm:$0xff] }
  0x33   :  { %286 = vmatpush.msrb.mxu1 %v216_v57  ;;  %239 = vmatpush.msra.mxu2 %v157_v23  ;;  %v334_v41 = vld [vmem:[#allocation7 + $0xd8] sm:$0xff]  ;;  %v332_v45 = vld [vmem:[#allocation7 + $0xc8] sm:$0xff]  ;;  %v331_v47 = vld [vmem:[#allocation7 + $0xc0] sm:$0xff] }
  0x34   :  { %267 = vmatpush.msrb.mxu0 %v182_v60  ;;  %259 = vmatpush.msra.mxu3 %v189_v28  ;;  %v318_v42 = vld [vmem:[#allocation7 + $0x58] sm:$0xff]  ;;  %v316_v46 = vld [vmem:[#allocation7 + $0x48] sm:$0xff]  ;;  %v315_v48 = vld [vmem:[#allocation7 + $0x40] sm:$0xff] }
  0x35   :  { %287 = vmatpush.msrb.mxu1 %v214_v61  ;;  %240 = vmatpush.msra.mxu2 %v155_v27  ;;  %v330_v49 = vld [vmem:[#allocation7 + $0xb8] sm:$0xff]  ;;  %v329_v51 = vld [vmem:[#allocation7 + $0xb0] sm:$0xff]  ;;  %v328_v52 = vld [vmem:[#allocation7 + $0xa8] sm:$0xff] }
  0x36   :  { %268 = vmatpush.msrb.mxu0 %v180_v0  ;;  %260 = vmatpush.msra.mxu3 %v187_v31  ;;  %v314_v50 = vld [vmem:[#allocation7 + $0x38] sm:$0xff]  ;;  %v107_v53 = vld [vmem:[%s587_s2] sm:$0x3]  ;;  %v313_v63 = vld [vmem:[#allocation7 + $0x30] sm:$0xff] }
  0x37   :  { %288 = vmatpush.msrb.mxu1 %v212_v1  ;;  %343 = vmatpush.msrb.mxu2 %v322_v35  ;;  %v327_v54 = vld [vmem:[#allocation7 + $0xa0] sm:$0xff]  ;;  %v109_v55 = vperm.slane %v107_v53, 0  ;;  %v110_v56 = vperm.slane %v107_v53, 1  ;;  %v326_v0 = vld [vmem:[#allocation7 + $0x98] sm:$0xff]  ;;  %v312_v1 = vld [vmem:[#allocation7 + $0x28] sm:$0xff] }
  0x38   :  { %269 = vmatpush.msrb.mxu0 %v178_v2  ;;  %363 = vmatpush.msrb.mxu3 %v338_v33  ;;  %v325_v2 = vld [vmem:[#allocation7 + $0x90] sm:$0xff]  ;;  %v410_v23 = vld [vmem:[%s591_s6] ss:$0 sm:$0xff] }
  0x39   :  { %289 = vmatpush.msrb.mxu1 %v210_v3  ;;  %344 = vmatpush.msrb.mxu2 %v321_v36  ;;  %v311_v3 = vld [vmem:[#allocation7 + $0x20] sm:$0xff] }
  0x3a   :  { %270 = vmatpush.msrb.mxu0 %v176_v4  ;;  %364 = vmatpush.msrb.mxu3 %v337_v34  ;;  %v324_v4 = vld [vmem:[#allocation7 + $0x88] sm:$0xff] }
  0x3b   :  { %290 = vmatpush.msrb.mxu1 %v208_v5  ;;  %345 = vmatpush.msrb.mxu2 %v320_v38  ;;  %v310_v5 = vld [vmem:[#allocation7 + $0x18] sm:$0xff] }
  0x3c   :  { %271 = vmatpush.msrb.mxu0 %v174_v6  ;;  %365 = vmatpush.msrb.mxu3 %v336_v37  ;;  %v323_v6 = vld [vmem:[#allocation7 + $0x80] sm:$0xff] }
  0x3d   :  { %291 = vmatpush.msrb.mxu1 %v206_v7  ;;  %346 = vmatpush.msrb.mxu2 %v319_v40  ;;  %v309_v7 = vld [vmem:[#allocation7 + $0x10] sm:$0xff] }
  0x3e   :  { %272 = vmatpush.msrb.mxu0 %v172_v8  ;;  %366 = vmatpush.msrb.mxu3 %v335_v39  ;;  %v308_v8 = vld [vmem:[#allocation7 + $0x8] sm:$0xff] }
  0x3f   :  { %292 = vmatpush.msrb.mxu1 %v204_v9  ;;  %347 = vmatpush.msrb.mxu2 %v318_v42  ;;  %v307_v9 = vld [vmem:[#allocation7] sm:$0xff] }
  0x40   :  { %273 = vmatpush.msrb.mxu0 %v170_v10  ;;  %367 = vmatpush.msrb.mxu3 %v334_v41  ;;  %v219_v10 = vld [vmem:[%s589_s4] sm:$0x3]  ;;  %s520_s4 = smov [#allocation8]  }
  0x41   :  { %293 = vmatpush.msrb.mxu1 %v202_v11  ;;  %348 = vmatpush.msrb.mxu2 %v317_v44  ;;  %v222_v11 = vperm.slane %v219_v10, 1  ;;  %s389_s23 = sshll.u32 %s520_s4, 4  ;;  %s390_s23 = int_to_ptr.vmem [resolvable:$true] %s389_s23 }
  0x42   :  { %274 = vmatpush.msrb.mxu0 %v168_v12  ;;  %368 = vmatpush.msrb.mxu3 %v333_v43 }
  0x43   :  { %294 = vmatpush.msrb.mxu1 %v200_v13  ;;  %349 = vmatpush.msrb.mxu2 %v316_v46 }
  0x44   :  { %275 = vmatpush.msrb.mxu0 %v166_v14  ;;  %369 = vmatpush.msrb.mxu3 %v332_v45 }
  0x45   :  { %295 = vmatpush.msrb.mxu1 %v198_v15  ;;  %350 = vmatpush.msrb.mxu2 %v315_v48 }
  0x46   :  { %276 = vmatpush.msrb.mxu0 %v164_v16  ;;  %370 = vmatpush.msrb.mxu3 %v331_v47  ;;  %v221_v16 = vperm.slane %v219_v10, 0 }
  0x47   :  { %296 = vmatpush.msrb.mxu1 %v196_v17  ;;  %351 = vmatpush.msrb.mxu2 %v314_v50 }
  0x48   :  { %277 = vmatpush.msrb.mxu0 %v162_v18  ;;  %371 = vmatpush.msrb.mxu3 %v330_v49 }
  0x49   :  { %297 = vmatpush.msrb.mxu1 %v194_v22  ;;  %352 = vmatpush.msrb.mxu2 %v313_v63 }
  0x4a   :  { %278 = vmatpush.msrb.mxu0 %v160_v21  ;;  %372 = vmatpush.msrb.mxu3 %v329_v51 }
  0x4b   :  { %298 = vmatpush.msrb.mxu1 %v192_v26  ;;  %353 = vmatpush.msrb.mxu2 %v312_v1 }
  0x4c   :  { %279 = vmatpush.msrb.mxu0 %v158_v25  ;;  %373 = vmatpush.msrb.mxu3 %v328_v52 }
  0x4d   :  { %299 = vmatpush.msrb.mxu1 %v190_v30  ;;  %354 = vmatpush.msrb.mxu2 %v311_v3 }
  0x4e   :  { %280 = vmatpush.msrb.mxu0 %v156_v29  ;;  %374 = vmatpush.msrb.mxu3 %v327_v54 }
  0x4f   :  { %300 = vmatpush.msrb.mxu1 %v188_v32  ;;  %355 = vmatpush.msrb.mxu2 %v310_v5 }
  0x50   :  { %375 = vmatpush.msrb.mxu3 %v326_v0 }
  0x51   :  { %356 = vmatpush.msrb.mxu2 %v309_v7 }
  0x52   :  { %376 = vmatpush.msrb.mxu3 %v325_v2 }
  0x53   :  { %357 = vmatpush.msrb.mxu2 %v308_v8 }
  0x54   :  { %377 = vmatpush.msrb.mxu3 %v324_v4 }
  0x55   :  { %358 = vmatpush.msrb.mxu2 %v307_v9 }
  0x56   :  { %378 = vmatpush.msrb.mxu3 %v323_v6 }
  0xac   :  { %v130_v57 = vpop.f32.mrf.mxu0 }
  0xad   :  { %v150_v58 = vpop.f32.mrf.mxu1  ;;  %v131_v59 = vadd.f32 %v130_v57, %v109_v55 }
  0xae   :  { %v151_v60 = vadd.f32 %v150_v58, %v110_v56 }
  0xaf   :  { %v153_v61 = vmax.f32 %v131_v59, 0.0 }
  0xb0   :  { %v154_v62 = vmax.f32 %v151_v60, 0.0 }
  0xb1   :  { %241 = vmatmul.f32.vlgmr.msra.gmra.mxu2 %v153_v61  ;;  %281 = vmatmul.f32.vlgmr.msrb.gmra.mxu0 %v153_v61 }
  0xb2   :  { %261 = vmatmul.f32.vlgmr.msra.gmra.mxu3 %v154_v62  ;;  %301 = vmatmul.f32.vlgmr.msrb.gmra.mxu1 %v154_v62 }
 0x12e   :  { %v282_v12 = vpop.f32.mrf.mxu0 }
 0x12f   :  { %v283_v13 = vadd.f32 %v282_v12, %v222_v11  ;;  %v302_v14 = vpop.f32.mrf.mxu1 }
 0x131   :  { %v303_v15 = vadd.f32 %v302_v14, %v283_v13 }
 0x133   :  { %v306_v17 = vmax.f32 %v303_v15, 0.0 }
 0x134   :  { %v242_v18 = vpop.f32.mrf.mxu2 }
 0x135   :  { %v243_v19 = vadd.f32 %v242_v18, %v221_v16  ;;  %379 = vmatmul.f32.vlgmr.msrb.gmra.mxu3 %v306_v17  ;;  %v262_v20 = vpop.f32.mrf.mxu3 }
 0x137   :  { %v263_v21 = vadd.f32 %v262_v20, %v243_v19 }
 0x139   :  { %v305_v22 = vmax.f32 %v263_v21, 0.0 }
 0x13b   :  { %359 = vmatmul.f32.vlgmr.msrb.gmra.mxu2 %v305_v22 }
 0x1b8   :  { %v380_v26 = vpop.f32.mrf.mxu3 }
 0x1be   :  { %v360_v24 = vpop.f32.mrf.mxu2 }
 0x1bf   :  { %v361_v25 = vadd.f32 %v410_v23, %v360_v24 }
 0x1c1   :  { %v381_v27 = vadd.f32 %v380_v26, %v361_v25 }
 0x1c3   :  { %383 = vst [vmem:[#allocation8] sm:$0xff] %v381_v27 }
 0x1c4   :  { %394 = dma.vmem_to_hbm [thread:$0]  %s390_s23, 128, %s392_s26, [#allocation4]  }
 0x1c5   :  { %511 = dma.done.wait [#allocation4], 128  }
 0x1c6   :  { %512 = vsyncadd [#allocation4], 4294967168 }
 0x1c7   :  { %399 = vsyncpa [#allocation3], 1 }
 0x1c8   :  { %400 = vsyncpa [#allocation6], 1 }
 0x1c9   :  { %401 = vsyncpa [#allocation4], 1 }

// kernel: mlp_forward.1
= control target key start
LH: loop header
LB: loop body
LE: loop exit
PB: predicated region body
PF: predicated region fallthrough
CT: control target
= control target key end

     0   :  { %12 = vsyncpa [#allocation3], 0  ;;  %s585_s0 = inlined_call_operand.vmem [shape: f32[8,128], index: 0, kind: input, shape index: {}]   ;;  %s586_s1 = inlined_call_operand.hbm [shape: f32[128,256], index: 1, kind: input, shape index: {}]   ;;  %s587_s2 = inlined_call_operand.vmem [shape: f32[1,256], index: 2, kind: input, shape index: {}]   ;;  %s588_s3 = inlined_call_operand.hbm [shape: f32[256,256], index: 3, kind: input, shape index: {}]   ;;  %s589_s4 = inlined_call_operand.vmem [shape: f32[1,256], index: 4, kind: input, shape index: {}]   ;;  %s590_s5 = inlined_call_operand.hbm [shape: f32[256,128], index: 5, kind: input, shape index: {}]   ;;  %s591_s6 = inlined_call_operand.vmem [shape: f32[1,128], index: 6, kind: input, shape index: {}]   ;;  %s592_s7 = inlined_call_operand.hbm [shape: f32[8,128], index: 7, kind: output, shape index: {}]  }
   0x1   :  { %13 = vsyncpa [#allocation6], 0 }
   0x2   :  { %14 = vsyncpa [#allocation4], 0  ;;  %s36_s26 = sshll.u32 %s588_s3, 4  ;;  %s513_s27 = smov [#allocation5]   ;;  %s37_s26 = int_to_ptr.hbm [resolvable:$true] %s36_s26 }
   0x3   :  { %s38_s28 = sshll.u32 %s513_s27, 4  ;;  %s21_s8 = sshll.u32 %s586_s1, 4  ;;  %s39_s28 = int_to_ptr.vmem [resolvable:$true] %s38_s28  ;;  %s22_s8 = int_to_ptr.hbm [resolvable:$true] %s21_s8 }
   0x4   :  { %s514_s9 = smov 256   ;;  %s515_s10 = smov 16  }
   0x5   :  { %44 = dma.hbm_to_vmem [thread:$0]  %s37_s26, 8192, %s39_s28, [#allocation6], %s514_s9, %s514_s9, %s515_s10  }
   0x6   :  { %s516_s11 = smov [#allocation2]   ;;  %s51_s15 = sshll.u32 %s590_s5, 4  ;;  %s52_s15 = int_to_ptr.hbm [resolvable:$true] %s51_s15 }
   0x7   :  { %s23_s12 = sshll.u32 %s516_s11, 4  ;;  %s517_s3 = smov [#allocation7]   ;;  %s24_s12 = int_to_ptr.vmem [resolvable:$true] %s23_s12 }
   0x8   :  { %29 = dma.hbm_to_vmem [thread:$0]  %s22_s8, 4096, %s24_s12, [#allocation3], %s514_s9, %s514_s9, %s515_s10  }
   0x9   :  { %s53_s16 = sshll.u32 %s517_s3, 4  ;;  %s518_s17 = smov 128   ;;  %s54_s16 = int_to_ptr.vmem [resolvable:$true] %s53_s16 }
   0xa   :  { %s519_s18 = smov 8  }
   0xb   :  { %59 = dma.hbm_to_vmem [thread:$0]  %s52_s15, 4096, %s54_s16, [#allocation6], %s518_s17, %s518_s17, %s519_s18  }
   0xc   :  { %507 = dma.done.wait [#allocation3], 4096  }
   0xd   :  { %508 = vsyncadd [#allocation3], 4294963200 }
   0xe   :  { %509 = dma.done.wait [#allocation6], 12288  }
   0xf   :  { %510 = vsyncadd [#allocation6], 4294955008  ;;  %v105_v0 = vld [vmem:[#allocation2 + $0xf0] sm:$0xff]  ;;  %v103_v1 = vld [vmem:[#allocation2 + $0xe0] sm:$0xff]  ;;  %s391_s26 = sshll.u32 %s592_s7, 4  ;;  %s392_s26 = int_to_ptr.hbm [resolvable:$true] %s391_s26 }
  0x10   :  { %v106_v2 = vld [vmem:[#allocation2 + $0xf8] sm:$0xff]  ;;  %113 = vmatpush.msra.mxu0 %v105_v0  ;;  %v104_v3 = vld [vmem:[#allocation2 + $0xe8] sm:$0xff]  ;;  %v101_v4 = vld [vmem:[#allocation2 + $0xd0] sm:$0xff] }
  0x11   :  { %133 = vmatpush.msra.mxu1 %v106_v2  ;;  %v102_v5 = vld [vmem:[#allocation2 + $0xd8] sm:$0xff]  ;;  %v99_v6 = vld [vmem:[#allocation2 + $0xc0] sm:$0xff]  ;;  %v100_v7 = vld [vmem:[#allocation2 + $0xc8] sm:$0xff] }
  0x12   :  { %114 = vmatpush.msra.mxu0 %v103_v1  ;;  %v97_v8 = vld [vmem:[#allocation2 + $0xb0] sm:$0xff]  ;;  %v98_v9 = vld [vmem:[#allocation2 + $0xb8] sm:$0xff]  ;;  %v95_v10 = vld [vmem:[#allocation2 + $0xa0] sm:$0xff] }
  0x13   :  { %134 = vmatpush.msra.mxu1 %v104_v3  ;;  %v96_v11 = vld [vmem:[#allocation2 + $0xa8] sm:$0xff]  ;;  %v93_v12 = vld [vmem:[#allocation2 + $0x90] sm:$0xff]  ;;  %v94_v13 = vld [vmem:[#allocation2 + $0x98] sm:$0xff] }
  0x14   :  { %115 = vmatpush.msra.mxu0 %v101_v4  ;;  %v185_v14 = vld [vmem:[#allocation5 + $0xf0] sm:$0xff]  ;;  %v183_v15 = vld [vmem:[#allocation5 + $0xe0] sm:$0xff]  ;;  %v92_v17 = vld [vmem:[#allocation2 + $0x88] sm:$0xff] }
  0x15   :  { %135 = vmatpush.msra.mxu1 %v102_v5  ;;  %v91_v16 = vld [vmem:[#allocation2 + $0x80] sm:$0xff]  ;;  %225 = vmatpush.msra.mxu2 %v185_v14  ;;  %v217_v18 = vld [vmem:[#allocation5 + $0x1f0] sm:$0xff]  ;;  %v90_v22 = vld [vmem:[#allocation2 + $0x78] sm:$0xff] }
  0x16   :  { %116 = vmatpush.msra.mxu0 %v99_v6  ;;  %v181_v19 = vld [vmem:[#allocation5 + $0xd0] sm:$0xff]  ;;  %v215_v20 = vld [vmem:[#allocation5 + $0x1e0] sm:$0xff]  ;;  %245 = vmatpush.msra.mxu3 %v217_v18  ;;  %v88_v26 = vld [vmem:[#allocation2 + $0x68] sm:$0xff] }
  0x17   :  { %136 = vmatpush.msra.mxu1 %v100_v7  ;;  %v89_v21 = vld [vmem:[#allocation2 + $0x70] sm:$0xff]  ;;  %226 = vmatpush.msra.mxu2 %v183_v15  ;;  %v179_v23 = vld [vmem:[#allocation5 + $0xc0] sm:$0xff]  ;;  %v86_v30 = vld [vmem:[#allocation2 + $0x58] sm:$0xff] }
  0x18   :  { %117 = vmatpush.msra.mxu0 %v97_v8  ;;  %v213_v24 = vld [vmem:[#allocation5 + $0x1d0] sm:$0xff]  ;;  %v87_v25 = vld [vmem:[#allocation2 + $0x60] sm:$0xff]  ;;  %246 = vmatpush.msra.mxu3 %v215_v20  ;;  %v84_v34 = vld [vmem:[#allocation2 + $0x48] sm:$0xff] }
  0x19   :  { %137 = vmatpush.msra.mxu1 %v98_v9  ;;  %227 = vmatpush.msra.mxu2 %v181_v19  ;;  %v177_v27 = vld [vmem:[#allocation5 + $0xb0] sm:$0xff]  ;;  %v211_v28 = vld [vmem:[#allocation5 + $0x1c0] sm:$0xff]  ;;  %v82_v38 = vld [vmem:[#allocation2 + $0x38] sm:$0xff] }
  0x1a   :  { %118 = vmatpush.msra.mxu0 %v95_v10  ;;  %v85_v29 = vld [vmem:[#allocation2 + $0x50] sm:$0xff]  ;;  %247 = vmatpush.msra.mxu3 %v213_v24  ;;  %v175_v31 = vld [vmem:[#allocation5 + $0xa0] sm:$0xff]  ;;  %v80_v42 = vld [vmem:[#allocation2 + $0x28] sm:$0xff] }
  0x1b   :  { %138 = vmatpush.msra.mxu1 %v96_v11  ;;  %228 = vmatpush.msra.mxu2 %v179_v23  ;;  %v209_v32 = vld [vmem:[#allocation5 + $0x1b0] sm:$0xff]  ;;  %v83_v33 = vld [vmem:[#allocation2 + $0x40] sm:$0xff]  ;;  %v78_v46 = vld [vmem:[#allocation2 + $0x18] sm:$0xff] }
  0x1c   :  { %119 = vmatpush.msra.mxu0 %v93_v12  ;;  %248 = vmatpush.msra.mxu3 %v211_v28  ;;  %v173_v35 = vld [vmem:[#allocation5 + $0x90] sm:$0xff]  ;;  %v207_v36 = vld [vmem:[#allocation5 + $0x1a0] sm:$0xff]  ;;  %v76_v50 = vld [vmem:[#allocation2 + $0x8] sm:$0xff] }
  0x1d   :  { %139 = vmatpush.msra.mxu1 %v94_v13  ;;  %229 = vmatpush.msra.mxu2 %v177_v27  ;;  %v81_v37 = vld [vmem:[#allocation2 + $0x30] sm:$0xff]  ;;  %v171_v39 = vld [vmem:[#allocation5 + $0x80] sm:$0xff]  ;;  %v186_v52 = vld [vmem:[#allocation5 + $0xf8] sm:$0xff] }
  0x1e   :  { %120 = vmatpush.msra.mxu0 %v91_v16  ;;  %249 = vmatpush.msra.mxu3 %v209_v32  ;;  %v205_v40 = vld [vmem:[#allocation5 + $0x190] sm:$0xff]  ;;  %v79_v41 = vld [vmem:[#allocation2 + $0x20] sm:$0xff]  ;;  %v218_v53 = vld [vmem:[#allocation5 + $0x1f8] sm:$0xff] }
  0x1f   :  { %140 = vmatpush.msra.mxu1 %v92_v17  ;;  %230 = vmatpush.msra.mxu2 %v175_v31  ;;  %v169_v43 = vld [vmem:[#allocation5 + $0x70] sm:$0xff]  ;;  %v203_v44 = vld [vmem:[#allocation5 + $0x180] sm:$0xff]  ;;  %v184_v56 = vld [vmem:[#allocation5 + $0xe8] sm:$0xff] }
  0x20   :  { %121 = vmatpush.msra.mxu0 %v89_v21  ;;  %250 = vmatpush.msra.mxu3 %v207_v36  ;;  %v77_v45 = vld [vmem:[#allocation2 + $0x10] sm:$0xff]  ;;  %v167_v47 = vld [vmem:[#allocation5 + $0x60] sm:$0xff]  ;;  %v216_v57 = vld [vmem:[#allocation5 + $0x1e8] sm:$0xff] }
  0x21   :  { %141 = vmatpush.msra.mxu1 %v90_v22  ;;  %231 = vmatpush.msra.mxu2 %v173_v35  ;;  %v201_v48 = vld [vmem:[#allocation5 + $0x170] sm:$0xff]  ;;  %v75_v49 = vld [vmem:[#allocation2] sm:$0xff]  ;;  %v182_v60 = vld [vmem:[#allocation5 + $0xd8] sm:$0xff] }
  0x22   :  { %122 = vmatpush.msra.mxu0 %v87_v25  ;;  %251 = vmatpush.msra.mxu3 %v205_v40  ;;  %v74_v51 = vld [vmem:[%s585_s0] sm:$0xff]  ;;  %v165_v54 = vld [vmem:[#allocation5 + $0x50] sm:$0xff]  ;;  %v214_v61 = vld [vmem:[#allocation5 + $0x1d8] sm:$0xff] }
  0x23   :  { %142 = vmatpush.msra.mxu1 %v88_v26  ;;  %232 = vmatpush.msra.mxu2 %v171_v39  ;;  %v199_v55 = vld [vmem:[#allocation5 + $0x160] sm:$0xff]  ;;  %v197_v59 = vld [vmem:[#allocation5 + $0x150] sm:$0xff]  ;;  %v180_v0 = vld [vmem:[#allocation5 + $0xc8] sm:$0xff] }
  0x24   :  { %123 = vmatpush.msra.mxu0 %v85_v29  ;;  %252 = vmatpush.msra.mxu3 %v203_v44  ;;  %v163_v58 = vld [vmem:[#allocation5 + $0x40] sm:$0xff]  ;;  %v161_v62 = vld [vmem:[#allocation5 + $0x30] sm:$0xff]  ;;  %v212_v1 = vld [vmem:[#allocation5 + $0x1c8] sm:$0xff] }
  0x25   :  { %143 = vmatpush.msra.mxu1 %v86_v30  ;;  %233 = vmatpush.msra.mxu2 %v169_v43  ;;  %v195_v63 = vld [vmem:[#allocation5 + $0x140] sm:$0xff]  ;;  %v178_v2 = vld [vmem:[#allocation5 + $0xb8] sm:$0xff]  ;;  %v176_v4 = vld [vmem:[#allocation5 + $0xa8] sm:$0xff] }
  0x26   :  { %124 = vmatpush.msra.mxu0 %v83_v33  ;;  %253 = vmatpush.msra.mxu3 %v201_v48  ;;  %v210_v3 = vld [vmem:[#allocation5 + $0x1b8] sm:$0xff]  ;;  %v208_v5 = vld [vmem:[#allocation5 + $0x1a8] sm:$0xff]  ;;  %v159_v19 = vld [vmem:[#allocation5 + $0x20] sm:$0xff] }
  0x27   :  { %144 = vmatpush.msra.mxu1 %v84_v34  ;;  %234 = vmatpush.msra.mxu2 %v167_v47  ;;  %v174_v6 = vld [vmem:[#allocation5 + $0x98] sm:$0xff]  ;;  %v172_v8 = vld [vmem:[#allocation5 + $0x88] sm:$0xff]  ;;  %v193_v20 = vld [vmem:[#allocation5 + $0x130] sm:$0xff] }
  0x28   :  { %125 = vmatpush.msra.mxu0 %v81_v37  ;;  %254 = vmatpush.msra.mxu3 %v199_v55  ;;  %v206_v7 = vld [vmem:[#allocation5 + $0x198] sm:$0xff]  ;;  %v204_v9 = vld [vmem:[#allocation5 + $0x188] sm:$0xff]  ;;  %v157_v23 = vld [vmem:[#allocation5 + $0x10] sm:$0xff] }
  0x29   :  { %145 = vmatpush.msra.mxu1 %v82_v38  ;;  %235 = vmatpush.msra.mxu2 %v165_v54  ;;  %v170_v10 = vld [vmem:[#allocation5 + $0x78] sm:$0xff]  ;;  %v168_v12 = vld [vmem:[#allocation5 + $0x68] sm:$0xff]  ;;  %v191_v24 = vld [vmem:[#allocation5 + $0x120] sm:$0xff] }
  0x2a   :  { %126 = vmatpush.msra.mxu0 %v79_v41  ;;  %255 = vmatpush.msra.mxu3 %v197_v59  ;;  %v202_v11 = vld [vmem:[#allocation5 + $0x178] sm:$0xff]  ;;  %v200_v13 = vld [vmem:[#allocation5 + $0x168] sm:$0xff]  ;;  %v155_v27 = vld [vmem:[#allocation5] sm:$0xff] }
  0x2b   :  { %146 = vmatpush.msra.mxu1 %v80_v42  ;;  %236 = vmatpush.msra.mxu2 %v163_v58  ;;  %v166_v14 = vld [vmem:[#allocation5 + $0x58] sm:$0xff]  ;;  %v164_v16 = vld [vmem:[#allocation5 + $0x48] sm:$0xff]  ;;  %v189_v28 = vld [vmem:[#allocation5 + $0x110] sm:$0xff] }
  0x2c   :  { %127 = vmatpush.msra.mxu0 %v77_v45  ;;  %256 = vmatpush.msra.mxu3 %v195_v63  ;;  %v198_v15 = vld [vmem:[#allocation5 + $0x158] sm:$0xff]  ;;  %v196_v17 = vld [vmem:[#allocation5 + $0x148] sm:$0xff]  ;;  %v187_v31 = vld [vmem:[#allocation5 + $0x100] sm:$0xff] }
  0x2d   :  { %147 = vmatpush.msra.mxu1 %v78_v46  ;;  %237 = vmatpush.msra.mxu2 %v161_v62  ;;  %v162_v18 = vld [vmem:[#allocation5 + $0x38] sm:$0xff]  ;;  %v160_v21 = vld [vmem:[#allocation5 + $0x28] sm:$0xff]  ;;  %v337_v34 = vld [vmem:[#allocation7 + $0xf0] sm:$0xff] }
  0x2e   :  { %128 = vmatpush.msra.mxu0 %v75_v49  ;;  %257 = vmatpush.msra.mxu3 %v193_v20  ;;  %v194_v22 = vld [vmem:[#allocation5 + $0x138] sm:$0xff]  ;;  %v192_v26 = vld [vmem:[#allocation5 + $0x128] sm:$0xff]  ;;  %v321_v36 = vld [vmem:[#allocation7 + $0x70] sm:$0xff] }
  0x2f   :  { %148 = vmatpush.msra.mxu1 %v76_v50  ;;  %129 = vmatmul.f32.vlgmr.msra.gmra.mxu0 %v74_v51  ;;  %v158_v25 = vld [vmem:[#allocation5 + $0x18] sm:$0xff]  ;;  %v156_v29 = vld [vmem:[#allocation5 + $0x8] sm:$0xff]  ;;  %v335_v39 = vld [vmem:[#allocation7 + $0xe0] sm:$0xff] }
  0x30   :  { %149 = vmatmul.f32.vlgmr.msra.gmra.mxu1 %v74_v51  ;;  %265 = vmatpush.msrb.mxu0 %v186_v52  ;;  %v190_v30 = vld [vmem:[#allocation5 + $0x118] sm:$0xff]  ;;  %v188_v32 = vld [vmem:[#allocation5 + $0x108] sm:$0xff]  ;;  %v319_v40 = vld [vmem:[#allocation7 + $0x60] sm:$0xff] }
  0x31   :  { %285 = vmatpush.msrb.mxu1 %v218_v53  ;;  %238 = vmatpush.msra.mxu2 %v159_v19  ;;  %v338_v33 = vld [vmem:[#allocation7 + $0xf8] sm:$0xff]  ;;  %v336_v37 = vld [vmem:[#allocation7 + $0xe8] sm:$0xff]  ;;  %v333_v43 = vld [vmem:[#allocation7 + $0xd0] sm:$0xff] }
  0x32   :  { %266 = vmatpush.msrb.mxu0 %v184_v56  ;;  %258 = vmatpush.msra.mxu3 %v191_v24  ;;  %v322_v35 = vld [vmem:[#allocation7 + $0x78] sm:$0xff]  ;;  %v320_v38 = vld [vmem:[#allocation7 + $0x68] sm:$0xff]  ;;  %v317_v44 = vld [vmem:[#allocation7 + $0x50] sm:$0xff] }
  0x33   :  { %286 = vmatpush.msrb.mxu1 %v216_v57  ;;  %239 = vmatpush.msra.mxu2 %v157_v23  ;;  %v334_v41 = vld [vmem:[#allocation7 + $0xd8] sm:$0xff]  ;;  %v332_v45 = vld [vmem:[#allocation7 + $0xc8] sm:$0xff]  ;;  %v331_v47 = vld [vmem:[#allocation7 + $0xc0] sm:$0xff] }
  0x34   :  { %267 = vmatpush.msrb.mxu0 %v182_v60  ;;  %259 = vmatpush.msra.mxu3 %v189_v28  ;;  %v318_v42 = vld [vmem:[#allocation7 + $0x58] sm:$0xff]  ;;  %v316_v46 = vld [vmem:[#allocation7 + $0x48] sm:$0xff]  ;;  %v315_v48 = vld [vmem:[#allocation7 + $0x40] sm:$0xff] }
  0x35   :  { %287 = vmatpush.msrb.mxu1 %v214_v61  ;;  %240 = vmatpush.msra.mxu2 %v155_v27  ;;  %v330_v49 = vld [vmem:[#allocation7 + $0xb8] sm:$0xff]  ;;  %v329_v51 = vld [vmem:[#allocation7 + $0xb0] sm:$0xff]  ;;  %v328_v52 = vld [vmem:[#allocation7 + $0xa8] sm:$0xff] }
  0x36   :  { %268 = vmatpush.msrb.mxu0 %v180_v0  ;;  %260 = vmatpush.msra.mxu3 %v187_v31  ;;  %v314_v50 = vld [vmem:[#allocation7 + $0x38] sm:$0xff]  ;;  %v107_v53 = vld [vmem:[%s587_s2] sm:$0x3]  ;;  %v313_v63 = vld [vmem:[#allocation7 + $0x30] sm:$0xff] }
  0x37   :  { %288 = vmatpush.msrb.mxu1 %v212_v1  ;;  %343 = vmatpush.msrb.mxu2 %v322_v35  ;;  %v327_v54 = vld [vmem:[#allocation7 + $0xa0] sm:$0xff]  ;;  %v109_v55 = vperm.slane %v107_v53, 0  ;;  %v110_v56 = vperm.slane %v107_v53, 1  ;;  %v326_v0 = vld [vmem:[#allocation7 + $0x98] sm:$0xff]  ;;  %v312_v1 = vld [vmem:[#allocation7 + $0x28] sm:$0xff] }
  0x38   :  { %269 = vmatpush.msrb.mxu0 %v178_v2  ;;  %363 = vmatpush.msrb.mxu3 %v338_v33  ;;  %v325_v2 = vld [vmem:[#allocation7 + $0x90] sm:$0xff]  ;;  %v410_v23 = vld [vmem:[%s591_s6] ss:$0 sm:$0xff] }
  0x39   :  { %289 = vmatpush.msrb.mxu1 %v210_v3  ;;  %344 = vmatpush.msrb.mxu2 %v321_v36  ;;  %v311_v3 = vld [vmem:[#allocation7 + $0x20] sm:$0xff] }
  0x3a   :  { %270 = vmatpush.msrb.mxu0 %v176_v4  ;;  %364 = vmatpush.msrb.mxu3 %v337_v34  ;;  %v324_v4 = vld [vmem:[#allocation7 + $0x88] sm:$0xff] }
  0x3b   :  { %290 = vmatpush.msrb.mxu1 %v208_v5  ;;  %345 = vmatpush.msrb.mxu2 %v320_v38  ;;  %v310_v5 = vld [vmem:[#allocation7 + $0x18] sm:$0xff] }
  0x3c   :  { %271 = vmatpush.msrb.mxu0 %v174_v6  ;;  %365 = vmatpush.msrb.mxu3 %v336_v37  ;;  %v323_v6 = vld [vmem:[#allocation7 + $0x80] sm:$0xff] }
  0x3d   :  { %291 = vmatpush.msrb.mxu1 %v206_v7  ;;  %346 = vmatpush.msrb.mxu2 %v319_v40  ;;  %v309_v7 = vld [vmem:[#allocation7 + $0x10] sm:$0xff] }
  0x3e   :  { %272 = vmatpush.msrb.mxu0 %v172_v8  ;;  %366 = vmatpush.msrb.mxu3 %v335_v39  ;;  %v308_v8 = vld [vmem:[#allocation7 + $0x8] sm:$0xff] }
  0x3f   :  { %292 = vmatpush.msrb.mxu1 %v204_v9  ;;  %347 = vmatpush.msrb.mxu2 %v318_v42  ;;  %v307_v9 = vld [vmem:[#allocation7] sm:$0xff] }
  0x40   :  { %273 = vmatpush.msrb.mxu0 %v170_v10  ;;  %367 = vmatpush.msrb.mxu3 %v334_v41  ;;  %v219_v10 = vld [vmem:[%s589_s4] sm:$0x3]  ;;  %s520_s4 = smov [#allocation8]  }
  0x41   :  { %293 = vmatpush.msrb.mxu1 %v202_v11  ;;  %348 = vmatpush.msrb.mxu2 %v317_v44  ;;  %v222_v11 = vperm.slane %v219_v10, 1  ;;  %s389_s23 = sshll.u32 %s520_s4, 4  ;;  %s390_s23 = int_to_ptr.vmem [resolvable:$true] %s389_s23 }
  0x42   :  { %274 = vmatpush.msrb.mxu0 %v168_v12  ;;  %368 = vmatpush.msrb.mxu3 %v333_v43 }
  0x43   :  { %294 = vmatpush.msrb.mxu1 %v200_v13  ;;  %349 = vmatpush.msrb.mxu2 %v316_v46 }
  0x44   :  { %275 = vmatpush.msrb.mxu0 %v166_v14  ;;  %369 = vmatpush.msrb.mxu3 %v332_v45 }
  0x45   :  { %295 = vmatpush.msrb.mxu1 %v198_v15  ;;  %350 = vmatpush.msrb.mxu2 %v315_v48 }
  0x46   :  { %276 = vmatpush.msrb.mxu0 %v164_v16  ;;  %370 = vmatpush.msrb.mxu3 %v331_v47  ;;  %v221_v16 = vperm.slane %v219_v10, 0 }
  0x47   :  { %296 = vmatpush.msrb.mxu1 %v196_v17  ;;  %351 = vmatpush.msrb.mxu2 %v314_v50 }
  0x48   :  { %277 = vmatpush.msrb.mxu0 %v162_v18  ;;  %371 = vmatpush.msrb.mxu3 %v330_v49 }
  0x49   :  { %297 = vmatpush.msrb.mxu1 %v194_v22  ;;  %352 = vmatpush.msrb.mxu2 %v313_v63 }
  0x4a   :  { %278 = vmatpush.msrb.mxu0 %v160_v21  ;;  %372 = vmatpush.msrb.mxu3 %v329_v51 }
  0x4b   :  { %298 = vmatpush.msrb.mxu1 %v192_v26  ;;  %353 = vmatpush.msrb.mxu2 %v312_v1 }
  0x4c   :  { %279 = vmatpush.msrb.mxu0 %v158_v25  ;;  %373 = vmatpush.msrb.mxu3 %v328_v52 }
  0x4d   :  { %299 = vmatpush.msrb.mxu1 %v190_v30  ;;  %354 = vmatpush.msrb.mxu2 %v311_v3 }
  0x4e   :  { %280 = vmatpush.msrb.mxu0 %v156_v29  ;;  %374 = vmatpush.msrb.mxu3 %v327_v54 }
  0x4f   :  { %300 = vmatpush.msrb.mxu1 %v188_v32  ;;  %355 = vmatpush.msrb.mxu2 %v310_v5 }
  0x50   :  { %375 = vmatpush.msrb.mxu3 %v326_v0 }
  0x51   :  { %356 = vmatpush.msrb.mxu2 %v309_v7 }
  0x52   :  { %376 = vmatpush.msrb.mxu3 %v325_v2 }
  0x53   :  { %357 = vmatpush.msrb.mxu2 %v308_v8 }
  0x54   :  { %377 = vmatpush.msrb.mxu3 %v324_v4 }
  0x55   :  { %358 = vmatpush.msrb.mxu2 %v307_v9 }
  0x56   :  { %378 = vmatpush.msrb.mxu3 %v323_v6 }
  0xac   :  { %v130_v57 = vpop.f32.mrf.mxu0 }
  0xad   :  { %v150_v58 = vpop.f32.mrf.mxu1  ;;  %v131_v59 = vadd.f32 %v130_v57, %v109_v55 }
  0xae   :  { %v151_v60 = vadd.f32 %v150_v58, %v110_v56 }
  0xaf   :  { %v153_v61 = vmax.f32 %v131_v59, 0.0 }
  0xb0   :  { %v154_v62 = vmax.f32 %v151_v60, 0.0 }
  0xb1   :  { %241 = vmatmul.f32.vlgmr.msra.gmra.mxu2 %v153_v61  ;;  %281 = vmatmul.f32.vlgmr.msrb.gmra.mxu0 %v153_v61 }
  0xb2   :  { %261 = vmatmul.f32.vlgmr.msra.gmra.mxu3 %v154_v62  ;;  %301 = vmatmul.f32.vlgmr.msrb.gmra.mxu1 %v154_v62 }
 0x12e   :  { %v282_v12 = vpop.f32.mrf.mxu0 }
 0x12f   :  { %v283_v13 = vadd.f32 %v282_v12, %v222_v11  ;;  %v302_v14 = vpop.f32.mrf.mxu1 }
 0x131   :  { %v303_v15 = vadd.f32 %v302_v14, %v283_v13 }
 0x133   :  { %v306_v17 = vmax.f32 %v303_v15, 0.0 }
 0x134   :  { %v242_v18 = vpop.f32.mrf.mxu2 }
 0x135   :  { %v243_v19 = vadd.f32 %v242_v18, %v221_v16  ;;  %379 = vmatmul.f32.vlgmr.msrb.gmra.mxu3 %v306_v17  ;;  %v262_v20 = vpop.f32.mrf.mxu3 }
 0x137   :  { %v263_v21 = vadd.f32 %v262_v20, %v243_v19 }
 0x139   :  { %v305_v22 = vmax.f32 %v263_v21, 0.0 }
 0x13b   :  { %359 = vmatmul.f32.vlgmr.msrb.gmra.mxu2 %v305_v22 }
 0x1b8   :  { %v380_v26 = vpop.f32.mrf.mxu3 }
 0x1be   :  { %v360_v24 = vpop.f32.mrf.mxu2 }
 0x1bf   :  { %v361_v25 = vadd.f32 %v410_v23, %v360_v24 }
 0x1c1   :  { %v381_v27 = vadd.f32 %v380_v26, %v361_v25 }
 0x1c3   :  { %383 = vst [vmem:[#allocation8] sm:$0xff] %v381_v27 }
 0x1c4   :  { %394 = dma.vmem_to_hbm [thread:$0]  %s390_s23, 128, %s392_s26, [#allocation4]  }
 0x1c5   :  { %511 = dma.done.wait [#allocation4], 128  }
 0x1c6   :  { %512 = vsyncadd [#allocation4], 4294967168 }
 0x1c7   :  { %399 = vsyncpa [#allocation3], 1 }
 0x1c8   :  { %400 = vsyncpa [#allocation6], 1 }
 0x1c9   :  { %401 = vsyncpa [#allocation4], 1 }

</bundles_post_ra>
